<compile_context>
chip_gen: v7x
topology: tpu7x:2x2x1
jax: 0.10.0
libtpu: 0.0.40
codegen_flags: <defaults>
</compile_context>

<pallas_src>
import numpy as np
import jax
import jax.numpy as jnp
from jax.experimental import pallas as pl
from jax.experimental.pallas import tpu as pltpu

# ----------------------------- module "hyper-params" -----------------------------
SPAN = 6.0
NUM_ANCHORS = 10
ORDER = 3            # cubic spline, k=3
RANGE_SCALE = 1.0
INPUT_NOISE = False  # module defaults
OUTPUT_NOISE = True

LANES = 128
BLOCK_ROWS = 2048    # (2048, 128) f32 = 1 MiB per array per block


# ----------------------------- spline "parameter" setup ---------------------------
def _deboor_span_np(xv, t, coeffs, k, i):
    """Scalar De Boor evaluation of the polynomial piece of knot-span i."""
    d = [float(coeffs[j + i - k]) for j in range(k + 1)]
    for r in range(1, k + 1):
        for j in range(k, r - 1, -1):
            den = t[j + 1 + i - r] - t[j + i - k]
            alpha = 0.0 if den == 0.0 else (xv - t[j + i - k]) / den
            d[j] = (1.0 - alpha) * d[j - 1] + alpha * d[j]
    return d[k]


def _deboor_np(xv, t, coeffs, k):
    """Scalar De Boor with FITPACK-style clamped span index (splev ext=0)."""
    n_c = len(t) - k - 1
    i = k
    for j in range(k + 1, n_c):
        if xv >= t[j]:
            i += 1
    return _deboor_span_np(xv, t, coeffs, k, i)


def build_spline_spec(span=SPAN, num_anchors=NUM_ANCHORS, order=ORDER,
                      range_scale=RANGE_SCALE, seed=0):
    """Deterministic equivalent of the module's __init__:
    anchors x = linspace(-span, span), y ~ U(-span, span) (fixed seed),
    then fit an interpolating cubic B-spline (splrep(x, y, k=3, s=0) equivalent:
    clamped knot vector with interior knots at x[2:-2], coefficients from the
    B-spline collocation solve)."""
    k = order
    xa = np.linspace(-span, span, num_anchors)
    rng = np.random.RandomState(seed)
    ya = rng.uniform(-range_scale * span, range_scale * span, size=(num_anchors,))
    t = np.concatenate([np.full(k + 1, xa[0]), xa[2:-2], np.full(k + 1, xa[-1])])
    n_c = len(t) - k - 1  # == num_anchors
    # Collocation matrix B[p, q] = B_{q,k}(xa[p]) via De Boor with unit coeff vectors.
    B = np.zeros((num_anchors, n_c))
    for q in range(n_c):
        e = np.zeros(n_c)
        e[q] = 1.0
        for p in range(num_anchors):
            B[p, q] = _deboor_np(xa[p], t, e, k)
    c = np.linalg.solve(B, ya)
    return t, c, k


def bspline_to_ppoly(t, c, k):
    """Convert the clamped cubic B-spline (t, c, k) to piecewise cubic
    polynomials in local coordinates: breakpoints b[0..S] and, per segment s,
    coefficients [c0, c1, c2, c3] of  y = c0 + c1*u + c2*u^2 + c3*u^3,
    u = x - b[s].  The first / last segment polynomials also provide the
    splev ext=0 boundary extrapolation."""
    n_c = len(t) - k - 1
    breaks = [float(v) for v in t[k:n_c + 1]]      # distinct knots
    n_seg = len(breaks) - 1                        # == n_c - k
    coefs = []
    for s in range(n_seg):
        i = k + s
        xl, xr = breaks[s], breaks[s + 1]
        dxs = (xr - xl) * np.array([0.0, 1.0 / 3.0, 2.0 / 3.0, 1.0])
        ys = np.array([_deboor_span_np(xl + d, t, c, k, i) for d in dxs])
        V = np.vander(dxs, N=4, increasing=True)   # columns: 1, u, u^2, u^3
        p = np.linalg.solve(V, ys)                 # exact (cubic) up to f64 roundoff
        coefs.append([float(v) for v in p])
    return breaks, coefs


# ----------------------------- Pallas kernel --------------------------------------
def _make_ppoly_kernel(breaks, coefs, input_noise, output_noise):
    n_seg = len(coefs)
    interior = breaks[1:-1]   # n_seg - 1 interior segment boundaries

    def kernel(x_ref, z_ref, y_ref):
        x = x_ref[...]
        z = z_ref[...]
        if input_noise:
            x = x + z
        # Compare-driven coefficient selection (all constants baked in):
        # seg = #(x >= interior boundary); x below/above range keeps the
        # boundary segment -> splev ext=0 extrapolation.
        c0 = jnp.full_like(x, coefs[0][0])
        c1 = jnp.full_like(x, coefs[0][1])
        c2 = jnp.full_like(x, coefs[0][2])
        c3 = jnp.full_like(x, coefs[0][3])
        xl = jnp.full_like(x, breaks[0])
        for s in range(1, n_seg):
            m = x >= interior[s - 1]
            c0 = jnp.where(m, coefs[s][0], c0)
            c1 = jnp.where(m, coefs[s][1], c1)
            c2 = jnp.where(m, coefs[s][2], c2)
            c3 = jnp.where(m, coefs[s][3], c3)
            xl = jnp.where(m, breaks[s], xl)
        u = x - xl                                  # local coordinate
        y = ((c3 * u + c2) * u + c1) * u + c0       # Horner cubic
        if output_noise:
            y = y + z
        y_ref[...] = y

    return kernel


def random_spline_scm_forward(x, z, breaks, coefs,
                              input_noise=INPUT_NOISE, output_noise=OUTPUT_NOISE):
    """x, z: (N, 1) float32 column vectors (PyTorch module's .view(-1,1)
    convention).  Internally: flatten, pad only to a multiple of 128 lanes
    (no-op when N % 128 == 0), reshape to (rows, 128) f32 so elements map to
    lanes, then run a 1-D parallel grid of (block_rows, 128) blocks with a
    partial (masked) last block."""
    n = x.shape[0]
    flat_x = x.reshape(-1).astype(jnp.float32)
    flat_z = z.reshape(-1).astype(jnp.float32)
    pad = (-n) % LANES
    if pad:
        flat_x = jnp.pad(flat_x, (0, pad))
        flat_z = jnp.pad(flat_z, (0, pad))
    rows = (n + pad) // LANES
    x2 = flat_x.reshape(rows, LANES)
    z2 = flat_z.reshape(rows, LANES)

    # Big blocks (~1 MiB/array) for pipelining; never bigger than needed.
    block_rows = min(BLOCK_ROWS, ((rows + 7) // 8) * 8)
    grid = (pl.cdiv(rows, block_rows),)

    kernel = _make_ppoly_kernel(breaks, coefs, input_noise, output_noise)
    y2 = pl.pallas_call(
        kernel,
        out_shape=jax.ShapeDtypeStruct((rows, LANES), jnp.float32),
        grid_spec=pltpu.PrefetchScalarGridSpec(
            num_scalar_prefetch=0,
            grid=grid,
            in_specs=[pl.BlockSpec((block_rows, LANES), lambda i: (i, 0)),
                      pl.BlockSpec((block_rows, LANES), lambda i: (i, 0))],
            out_specs=pl.BlockSpec((block_rows, LANES), lambda i: (i, 0)),
        ),
        compiler_params=pltpu.CompilerParams(dimension_semantics=("parallel",)),
    )(x2, z2)
    return y2.reshape(-1)[:n].reshape(n, 1)


# ----------------------------------- demo -----------------------------------------
if __name__ == "__main__":
    t, c, k = build_spline_spec()
    breaks, coefs = bspline_to_ppoly(t, c, k)

    key = jax.random.PRNGKey(0)
    kx, kz = jax.random.split(key)
    N = 256
    x = jax.random.uniform(kx, (N, 1), jnp.float32, minval=-SPAN, maxval=SPAN)
    # z = RandomSplineSCM.sample(x.size()): standard normal, same shape as x.
    # TODO(synk): torch.normal has no in-kernel analog; z is sampled in glue
    # (optionally could be generated in-kernel with pltpu.prng_* to drop one
    # HBM stream if exact RNG parity is not required).
    z = jax.random.normal(kz, (N, 1), jnp.float32)

    y = random_spline_scm_forward(x, z, breaks, coefs)
    y = jax.block_until_ready(y)

    # NumPy reference (splev-equivalent De Boor) for correctness.
    x_np = np.asarray(x).reshape(-1).astype(np.float64)
    z_np = np.asarray(z).reshape(-1).astype(np.float64)
    xin = x_np + z_np if INPUT_NOISE else x_np
    y_spline = np.array([_deboor_np(v, t, c, k) for v in xin])
    y_ref = (y_spline + z_np if OUTPUT_NOISE else y_spline).reshape(-1, 1)

    assert y.shape == (N, 1) and y.dtype == jnp.float32
    assert np.allclose(np.asarray(y), y_ref, rtol=1e-3, atol=1e-3), "mismatch vs reference"
    print("KERNEL_OK")
</pallas_src>

<mosaic_0001>
module attributes {stable_mosaic.version = 11 : i64} {
  func.func @kernel(%arg0: i32, %arg1: memref<8x128xf32, #tpu.memory_space<vmem>>, %arg2: memref<8x128xf32, #tpu.memory_space<vmem>>, %arg3: memref<8x128xf32, #tpu.memory_space<vmem>>) attributes {dimension_semantics = [#tpu.dimension_semantics<parallel>], iteration_bounds = array<i64: 1>, scalar_prefetch = 0 : i64, scratch_operands = 0 : i64, tpu.core_type = #tpu.core_type<tc>, window_params = [{transform_indices = @transform_0, window_bounds = array<i64: 8, 128>}, {transform_indices = @transform_1, window_bounds = array<i64: 8, 128>}, {transform_indices = @transform_2, window_bounds = array<i64: 8, 128>}]} {
    %c0 = arith.constant 0 : index
    %c0_0 = arith.constant 0 : index
    %0 = vector.load %arg1[%c0, %c0_0] : memref<8x128xf32, #tpu.memory_space<vmem>>, vector<8x128xf32>
    %c0_1 = arith.constant 0 : index
    %c0_2 = arith.constant 0 : index
    %1 = vector.load %arg2[%c0_1, %c0_2] : memref<8x128xf32, #tpu.memory_space<vmem>>, vector<8x128xf32>
    %cst = arith.constant 5.857620e-01 : f32
    %2 = vector.broadcast %cst : f32 to vector<8x128xf32>
    %cst_3 = arith.constant 4.33440256 : f32
    %3 = vector.broadcast %cst_3 : f32 to vector<8x128xf32>
    %cst_4 = arith.constant -2.72116899 : f32
    %4 = vector.broadcast %cst_4 : f32 to vector<8x128xf32>
    %cst_5 = arith.constant 0.44505316 : f32
    %5 = vector.broadcast %cst_5 : f32 to vector<8x128xf32>
    %cst_6 = arith.constant -6.000000e+00 : f32
    %6 = vector.broadcast %cst_6 : f32 to vector<8x128xf32>
    %cst_7 = arith.constant -3.33333325 : f32
    %7 = vector.broadcast %cst_7 : f32 to vector<8x128xf32>
    %8 = arith.cmpf oge, %0, %7 : vector<8x128xf32>
    %cst_8 = arith.constant 1.2331605 : f32
    %9 = vector.broadcast %cst_8 : f32 to vector<8x128xf32>
    %10 = arith.select %8, %9, %2 : vector<8x128xi1>, vector<8x128xf32>
    %cst_9 = arith.constant -6.840310e-01 : f32
    %11 = vector.broadcast %cst_9 : f32 to vector<8x128xf32>
    %12 = arith.select %8, %11, %3 : vector<8x128xi1>, vector<8x128xf32>
    %cst_10 = arith.constant 0.839256405 : f32
    %13 = vector.broadcast %cst_10 : f32 to vector<8x128xf32>
    %14 = arith.select %8, %13, %4 : vector<8x128xi1>, vector<8x128xf32>
    %cst_11 = arith.constant -0.537693381 : f32
    %15 = vector.broadcast %cst_11 : f32 to vector<8x128xf32>
    %16 = arith.select %8, %15, %5 : vector<8x128xi1>, vector<8x128xf32>
    %cst_12 = arith.constant -3.33333325 : f32
    %17 = vector.broadcast %cst_12 : f32 to vector<8x128xf32>
    %18 = arith.select %8, %17, %6 : vector<8x128xi1>, vector<8x128xf32>
    %cst_13 = arith.constant -2.000000e+00 : f32
    %19 = vector.broadcast %cst_13 : f32 to vector<8x128xf32>
    %20 = arith.cmpf oge, %0, %19 : vector<8x128xf32>
    %cst_14 = arith.constant 0.53859818 : f32
    %21 = vector.broadcast %cst_14 : f32 to vector<8x128xf32>
    %22 = arith.select %20, %21, %10 : vector<8x128xi1>, vector<8x128xf32>
    %cst_15 = arith.constant -1.31371176 : f32
    %23 = vector.broadcast %cst_15 : f32 to vector<8x128xf32>
    %24 = arith.select %20, %23, %12 : vector<8x128xi1>, vector<8x128xf32>
    %cst_16 = arith.constant -1.311517 : f32
    %25 = vector.broadcast %cst_16 : f32 to vector<8x128xf32>
    %26 = arith.select %20, %25, %14 : vector<8x128xi1>, vector<8x128xf32>
    %cst_17 = arith.constant 1.10888195 : f32
    %27 = vector.broadcast %cst_17 : f32 to vector<8x128xf32>
    %28 = arith.select %20, %27, %16 : vector<8x128xi1>, vector<8x128xf32>
    %cst_18 = arith.constant -2.000000e+00 : f32
    %29 = vector.broadcast %cst_18 : f32 to vector<8x128xf32>
    %30 = arith.select %20, %29, %18 : vector<8x128xi1>, vector<8x128xf32>
    %cst_19 = arith.constant -0.666666686 : f32
    %31 = vector.broadcast %cst_19 : f32 to vector<8x128xf32>
    %32 = arith.cmpf oge, %0, %31 : vector<8x128xf32>
    %cst_20 = arith.constant -0.916142404 : f32
    %33 = vector.broadcast %cst_20 : f32 to vector<8x128xf32>
    %34 = arith.select %32, %33, %22 : vector<8x128xi1>, vector<8x128xf32>
    %cst_21 = arith.constant 1.10294664 : f32
    %35 = vector.broadcast %cst_21 : f32 to vector<8x128xf32>
    %36 = arith.select %32, %35, %24 : vector<8x128xi1>, vector<8x128xf32>
    %cst_22 = arith.constant 3.1240108 : f32
    %37 = vector.broadcast %cst_22 : f32 to vector<8x128xf32>
    %38 = arith.select %32, %37, %26 : vector<8x128xi1>, vector<8x128xf32>
    %cst_23 = arith.constant -1.83832908 : f32
    %39 = vector.broadcast %cst_23 : f32 to vector<8x128xf32>
    %40 = arith.select %32, %39, %28 : vector<8x128xi1>, vector<8x128xf32>
    %cst_24 = arith.constant -0.666666686 : f32
    %41 = vector.broadcast %cst_24 : f32 to vector<8x128xf32>
    %42 = arith.select %32, %41, %30 : vector<8x128xi1>, vector<8x128xf32>
    %cst_25 = arith.constant 0.666666686 : f32
    %43 = vector.broadcast %cst_25 : f32 to vector<8x128xf32>
    %44 = arith.cmpf oge, %0, %43 : vector<8x128xf32>
    %cst_26 = arith.constant 1.75072932 : f32
    %45 = vector.broadcast %cst_26 : f32 to vector<8x128xf32>
    %46 = arith.select %44, %45, %34 : vector<8x128xi1>, vector<8x128xf32>
    %cst_27 = arith.constant -0.370779514 : f32
    %47 = vector.broadcast %cst_27 : f32 to vector<8x128xf32>
    %48 = arith.select %44, %47, %36 : vector<8x128xi1>, vector<8x128xf32>
    %cst_28 = arith.constant -4.22930527 : f32
    %49 = vector.broadcast %cst_28 : f32 to vector<8x128xf32>
    %50 = arith.select %44, %49, %38 : vector<8x128xi1>, vector<8x128xf32>
    %cst_29 = arith.constant 2.32598877 : f32
    %51 = vector.broadcast %cst_29 : f32 to vector<8x128xf32>
    %52 = arith.select %44, %51, %40 : vector<8x128xi1>, vector<8x128xf32>
    %cst_30 = arith.constant 0.666666686 : f32
    %53 = vector.broadcast %cst_30 : f32 to vector<8x128xf32>
    %54 = arith.select %44, %53, %42 : vector<8x128xi1>, vector<8x128xf32>
    %cst_31 = arith.constant 2.000000e+00 : f32
    %55 = vector.broadcast %cst_31 : f32 to vector<8x128xf32>
    %56 = arith.cmpf oge, %0, %55 : vector<8x128xf32>
    %cst_32 = arith.constant -0.748953462 : f32
    %57 = vector.broadcast %cst_32 : f32 to vector<8x128xf32>
    %58 = arith.select %56, %57, %46 : vector<8x128xi1>, vector<8x128xf32>
    %cst_33 = arith.constant 0.756346583 : f32
    %59 = vector.broadcast %cst_33 : f32 to vector<8x128xf32>
    %60 = arith.select %56, %59, %48 : vector<8x128xi1>, vector<8x128xf32>
    %cst_34 = arith.constant 5.074650e+00 : f32
    %61 = vector.broadcast %cst_34 : f32 to vector<8x128xf32>
    %62 = arith.select %56, %61, %50 : vector<8x128xi1>, vector<8x128xf32>
    %cst_35 = arith.constant -1.93211687 : f32
    %63 = vector.broadcast %cst_35 : f32 to vector<8x128xf32>
    %64 = arith.select %56, %63, %52 : vector<8x128xi1>, vector<8x128xf32>
    %cst_36 = arith.constant 2.000000e+00 : f32
    %65 = vector.broadcast %cst_36 : f32 to vector<8x128xf32>
    %66 = arith.select %56, %65, %54 : vector<8x128xi1>, vector<8x128xf32>
    %cst_37 = arith.constant 3.33333325 : f32
    %67 = vector.broadcast %cst_37 : f32 to vector<8x128xf32>
    %68 = arith.cmpf oge, %0, %67 : vector<8x128xf32>
    %cst_38 = arith.constant 4.70127583 : f32
    %69 = vector.broadcast %cst_38 : f32 to vector<8x128xf32>
    %70 = arith.select %68, %69, %58 : vector<8x128xi1>, vector<8x128xf32>
    %cst_39 = arith.constant 3.98412323 : f32
    %71 = vector.broadcast %cst_39 : f32 to vector<8x128xf32>
    %72 = arith.select %68, %71, %60 : vector<8x128xi1>, vector<8x128xf32>
    %cst_40 = arith.constant -2.65381742 : f32
    %73 = vector.broadcast %cst_40 : f32 to vector<8x128xf32>
    %74 = arith.select %68, %73, %62 : vector<8x128xi1>, vector<8x128xf32>
    %cst_41 = arith.constant 0.113235712 : f32
    %75 = vector.broadcast %cst_41 : f32 to vector<8x128xf32>
    %76 = arith.select %68, %75, %64 : vector<8x128xi1>, vector<8x128xf32>
    %cst_42 = arith.constant 3.33333325 : f32
    %77 = vector.broadcast %cst_42 : f32 to vector<8x128xf32>
    %78 = arith.select %68, %77, %66 : vector<8x128xi1>, vector<8x128xf32>
    %79 = arith.subf %0, %78 : vector<8x128xf32>
    %80 = arith.mulf %76, %79 : vector<8x128xf32>
    %81 = arith.addf %80, %74 : vector<8x128xf32>
    %82 = arith.mulf %81, %79 : vector<8x128xf32>
    %83 = arith.addf %82, %72 : vector<8x128xf32>
    %84 = arith.mulf %83, %79 : vector<8x128xf32>
    %85 = arith.addf %84, %70 : vector<8x128xf32>
    %86 = arith.addf %85, %1 : vector<8x128xf32>
    %c0_43 = arith.constant 0 : index
    %c0_44 = arith.constant 0 : index
    %87 = vector.load %arg3[%c0_43, %c0_44] : memref<8x128xf32, #tpu.memory_space<vmem>>, vector<8x128xf32>
    tpu.vector_store %arg3[%c0_43, %c0_44], %86 {strides = array<i32>} : memref<8x128xf32, #tpu.memory_space<vmem>>, vector<8x128xf32>,
    return
  }
  func.func @transform_0(%arg0: i32) -> (i32, i32) {
    %c0_i32 = arith.constant 0 : i32
    %c0_i32_0 = arith.constant 0 : i32
    return %arg0, %c0_i32 : i32, i32
  }
  func.func @transform_1(%arg0: i32) -> (i32, i32) {
    %c0_i32 = arith.constant 0 : i32
    %c0_i32_0 = arith.constant 0 : i32
    return %arg0, %c0_i32 : i32, i32
  }
  func.func @transform_2(%arg0: i32) -> (i32, i32) {
    %c0_i32 = arith.constant 0 : i32
    %c0_i32_0 = arith.constant 0 : i32
    return %arg0, %c0_i32 : i32, i32
  }
}

</mosaic_0001>

<bundles_post_ra>
// kernel: tpu_custom_call.1
= control target key start
LH: loop header
LB: loop body
LE: loop exit
PB: predicated region body
PF: predicated region fallthrough
CT: control target
= control target key end

     0   :  { %7 = vsyncpa [#allocation3], 0  ;;  %s234_s0 = inlined_call_operand.hbm [shape: f32[2,128], index: 0, kind: input, shape index: {}]   ;;  %s235_s1 = inlined_call_operand.vmem [shape: f32[2,128], index: 1, kind: input, shape index: {}]   ;;  %s236_s2 = inlined_call_operand.hbm [shape: f32[2,128], index: 2, kind: output, shape index: {}]  }
   0x1   :  { %8 = vsyncpa [#allocation4], 0 }
   0x2   :  { %13 = vsyncadd [#allocation3], 96  ;;  %s147_s9 = smov [#allocation2]   ;;  %s99_s13 = scalar_lea.hbm %s234_s0, 32 }
   0x3   :  { %s14_s10 = sshll.u32 %s147_s9, 4  ;;  %p100_p0 = scmp.ne.s32.totalorder %s234_s0, %s99_s13  ;;  %s15_s10 = int_to_ptr.vmem [resolvable:$true] %s14_s10 }
   0x4   :  { %p103_p1 = scmp.lt.u32.totalorder %s99_s13, %s234_s0 }
   0x6   :  { %p105_p2 = pnand %p103_p1, %p100_p0 }
   0x8   :  { %108 = shalt.err (!%p105_p2)
}
   0x9   :  { %s109_s18 = scalar_lea.vmem %s15_s10, 32  ;;  %s113_s19 = scalar_lea.vmem %s15_s10, 128 }
   0xa   :  { %p110_p3 = scmp.ne.s32.totalorder %s15_s10, %s109_s18  ;;  %p114_p4 = scmp.lt.s32.totalorder %s15_s10, %s15_s10 }
   0xb   :  { %p115_p5 = scmp.lt.s32.totalorder %s113_s19, %s109_s18 }
   0xd   :  { %p116_p6 = por %p115_p5, %p114_p4 }
   0xf   :  { %p117_p7 = pnand %p116_p6, %p110_p3 }
  0x11   :  { %120 = shalt.err (!%p117_p7)
}
  0x12   :  { %s148_s20 = smov 32   ;;  %s149_s21 = smov 2  }
  0x13   :  { %20 = dma.hbm_to_vmem [thread:$0]  %s234_s0, 32, %s15_s10, [#allocation3], %s148_s20, %s148_s20, %s149_s21  }
  0x14   :  { %143 = dma.done.wait [#allocation3], 128  }
  0x15   :  { %144 = vsyncadd [#allocation3], 4294967168  ;;  %v26_v0 = vld [vmem:[#allocation2] sm:$0xff]  ;;  %v150_v1 = vmov 4.3344026   ;;  %v153_v7 = vmov -6.0  }
  0x16   :  { %vm28_vm0 = vcmp.ge.f32.partialorder %v26_v0, -3.3333333  ;;  %v151_v3 = vmov -2.721169   ;;  %vm34_vm1 = vcmp.ge.f32.partialorder %v26_v0, -2.0  ;;  %vm52_vm4 = vcmp.ge.f32.partialorder %v26_v0, 2.0 }
  0x17   :  { %v30_v2 = vsel %vm28_vm0, -0.684031, %v150_v1  ;;  %v31_v4 = vsel %vm28_vm0, 0.8392564, %v151_v3  ;;  %v152_v5 = vmov 0.44505316  }
  0x18   :  { %v32_v6 = vsel %vm28_vm0, -0.5376934, %v152_v5  ;;  %v33_v8 = vsel %vm28_vm0, -3.3333333, %v153_v7  ;;  %vm40_vm2 = vcmp.ge.f32.partialorder %v26_v0, -0.6666667 }
  0x19   :  { %v37_v9 = vsel %vm34_vm1, -1.311517, %v31_v4  ;;  %v38_v10 = vsel %vm34_vm1, 1.108882, %v32_v6  ;;  %v36_v11 = vsel %vm34_vm1, -1.3137118, %v30_v2 }
  0x1a   :  { %v39_v12 = vsel %vm34_vm1, -2.0, %v33_v8  ;;  %v43_v13 = vsel %vm40_vm2, 3.1240108, %v37_v9  ;;  %v44_v14 = vsel %vm40_vm2, -1.8383291, %v38_v10  ;;  %v27_v42 = vld [vmem:[%s235_s1] sm:$0xff] }
  0x1b   :  { %v45_v15 = vsel %vm40_vm2, -0.6666667, %v39_v12  ;;  %v154_v16 = vmov 0.585762   ;;  %vm46_vm3 = vcmp.ge.f32.partialorder %v26_v0, 0.6666667 }
  0x1c   :  { %v29_v17 = vsel %vm28_vm0, 1.2331605, %v154_v16  ;;  %v42_v18 = vsel %vm40_vm2, 1.1029466, %v36_v11  ;;  %v49_v19 = vsel %vm46_vm3, -4.2293053, %v43_v13 }
  0x1d   :  { %v50_v20 = vsel %vm46_vm3, 2.3259888, %v44_v14  ;;  %v51_v21 = vsel %vm46_vm3, 0.6666667, %v45_v15  ;;  %vm58_vm5 = vcmp.ge.f32.partialorder %v26_v0, 3.3333333 }
  0x1e   :  { %v35_v22 = vsel %vm34_vm1, 0.5385982, %v29_v17  ;;  %v56_v23 = vsel %vm52_vm4, -1.9321169, %v50_v20  ;;  %v55_v24 = vsel %vm52_vm4, 5.07465, %v49_v19 }
  0x1f   :  { %v57_v25 = vsel %vm52_vm4, 2.0, %v51_v21  ;;  %v48_v26 = vsel %vm46_vm3, -0.3707795, %v42_v18  ;;  %v62_v27 = vsel %vm58_vm5, 0.11323571, %v56_v23 }
  0x20   :  { %v63_v28 = vsel %vm58_vm5, 3.3333333, %v57_v25  ;;  %v41_v29 = vsel %vm40_vm2, -0.9161424, %v35_v22  ;;  %v61_v31 = vsel %vm58_vm5, -2.6538174, %v55_v24 }
  0x21   :  { %v64_v30 = vsub.f32 %v26_v0, %v63_v28  ;;  %v54_v32 = vsel %vm52_vm4, 0.7563466, %v48_v26  ;;  %v47_v34 = vsel %vm46_vm3, 1.7507293, %v41_v29 }
  0x22   :  { %v60_v36 = vsel %vm58_vm5, 3.9841232, %v54_v32  ;;  %v53_v37 = vsel %vm52_vm4, -0.74895346, %v47_v34 }
  0x23   :  { %v65_v33 = vmul.f32 %v64_v30, %v62_v27  ;;  %v59_v40 = vsel %vm58_vm5, 4.701276, %v53_v37 }
  0x25   :  { %v66_v35 = vadd.f32 %v65_v33, %v61_v31 }
  0x27   :  { %v67_v38 = vmul.f32 %v66_v35, %v64_v30 }
  0x29   :  { %v68_v39 = vadd.f32 %v67_v38, %v60_v36 }
  0x2b   :  { %v69_v41 = vmul.f32 %v68_v39, %v64_v30 }
  0x2d   :  { %v70_v43 = vadd.f32 %v69_v41, %v59_v40 }
  0x2f   :  { %v71_v44 = vadd.f32 %v70_v43, %v27_v42 }
  0x31   :  { %72 = vst [vmem:[#allocation5] sm:$0xff] %v71_v44 }
  0x32   :  { %77 = vsyncadd [#allocation4], 96  ;;  %s155_s25 = smov [#allocation5]  }
  0x33   :  { %s78_s26 = sshll.u32 %s155_s25, 4  ;;  %s79_s26 = int_to_ptr.vmem [resolvable:$true] %s78_s26 }
  0x34   :  { %s121_s27 = scalar_lea.vmem %s79_s26, 32  ;;  %s125_s28 = scalar_lea.vmem %s79_s26, 128 }
  0x35   :  { %p122_p8 = scmp.ne.s32.totalorder %s79_s26, %s121_s27  ;;  %p126_p9 = scmp.lt.s32.totalorder %s79_s26, %s79_s26 }
  0x36   :  { %p127_p10 = scmp.lt.s32.totalorder %s125_s28, %s121_s27 }
  0x38   :  { %p128_p11 = por %p127_p10, %p126_p9 }
  0x3a   :  { %p129_p12 = pnand %p128_p11, %p122_p8 }
  0x3c   :  { %132 = shalt.err (!%p129_p12)
}
  0x3d   :  { %s133_s3 = scalar_lea.hbm %s236_s2, 32 }
  0x3e   :  { %p134_p13 = scmp.ne.s32.totalorder %s236_s2, %s133_s3  ;;  %p137_p0 = scmp.lt.u32.totalorder %s133_s3, %s236_s2 }
  0x40   :  { %p139_p1 = pnand %p137_p0, %p134_p13 }
  0x42   :  { %142 = shalt.err (!%p139_p1)
}
  0x43   :  { %84 = dma.vmem_to_hbm [thread:$0]  %s79_s26, 32, %s236_s2, [#allocation4], %s148_s20, %s148_s20, %s149_s21  }
  0x44   :  { %145 = dma.done.wait [#allocation4], 128  }
  0x45   :  { %146 = vsyncadd [#allocation4], 4294967168 }
  0x46   :  { %88 = vsyncpa [#allocation3], 1 }
  0x47   :  { %89 = vsyncpa [#allocation4], 1 }

</bundles_post_ra>
